<compile_context>
chip_gen: v7x
topology: tpu7x:2x2x1
jax: 0.10.0
libtpu: 0.0.40
codegen_flags: <defaults>
</compile_context>

<pallas_src>
import functools

import jax
import jax.numpy as jnp
import numpy as np
from jax.experimental import pallas as pl
from jax.experimental.pallas import tpu as pltpu


# ----------------------------------------------------------------------------
# Fused kernel: one batch element per grid step.
# ----------------------------------------------------------------------------
def fused_forward_kernel(x_ref, wfe_ref, bfe_ref, acat_ref, b1_ref, g_ref,
                         bout_ref, o_ref, *, W):
    # x_ref   : (1, C, T)      raw signal, T = 2*W (both day halves)
    # wfe_ref : (F*H, C)       pointwise Conv1d weight
    # bfe_ref : (F*H, 1)       pointwise Conv1d bias
    # acat_ref: (E*H, 3*F*H)   3x3 conv, dy taps folded in, dx taps = 3 blocks
    # b1_ref  : (E*H, 1)       3x3 conv bias (broadcast over h)
    # g_ref   : (2K, E*H)      (1x1 conv) o (decoder both orderings + average)
    # bout_ref: (K, 1)         folded output bias
    # o_ref   : (1, K, T)      averaged logits, time on lanes
    x = x_ref[0]                                                       # (C, T)

    # feature_extractor: pointwise Conv1d(C -> F*H) on both halves at once.
    feat = jnp.dot(wfe_ref[...], x,
                   preferred_element_type=jnp.float32) + bfe_ref[...]  # (F*H, T)

    # 3x3 SAME conv: time (dx) taps via pre-shifted copies with zeros at each
    # half's left/right border (halves are padded independently); height (dy)
    # taps are inside the block-banded A matrix.
    fh, t = feat.shape
    zcol = jnp.zeros((fh, 1), jnp.float32)
    f_m = jnp.concatenate([zcol, feat[:, :t - 1]], axis=1)             # feat[:, t-1]
    f_p = jnp.concatenate([feat[:, 1:], zcol], axis=1)                 # feat[:, t+1]
    lane = jax.lax.broadcasted_iota(jnp.int32, feat.shape, 1) % W
    f_m = jnp.where(lane != 0, f_m, 0.0)                               # zero at w == 0
    f_p = jnp.where(lane != W - 1, f_p, 0.0)                           # zero at w == W-1

    stack = jnp.concatenate([f_m, feat, f_p], axis=0)                  # (3*F*H, T)
    hid = jnp.maximum(
        jnp.dot(acat_ref[...], stack,
                preferred_element_type=jnp.float32) + b1_ref[...], 0.0)  # (E*H, T)

    # 1x1 conv (classes=1) + decoder (both [e1;e2] and [e2;e1] orderings) +
    # 2-day split/concat + averaging, all folded into one matmul with G.
    q = jnp.dot(g_ref[...], hid, preferred_element_type=jnp.float32)   # (2K, T)
    k = q.shape[0] // 2
    swapped = jnp.concatenate([q[k:, W:], q[k:, :W]], axis=1)          # swap day halves
    out = q[:k] + swapped + bout_ref[...]                              # (K, T)
    o_ref[0] = out.astype(o_ref.dtype)                                 # one store


# ----------------------------------------------------------------------------
# Weight folding (plain JAX, done once per call; exact algebraic refactor).
# ----------------------------------------------------------------------------
def derive_fused_params(params, F, H):
    w1_full = params["w1_full"]                       # (E, F, 3, 3)  OIHW
    E = w1_full.shape[0]
    wdec = params["w_dec"]                            # (2H, 2K)
    K = wdec.shape[1] // 2

    # A(dx): (E*H, F*H) band matrix realizing the dy taps of the 3x3 conv with
    # zero-padding in H built in (out-of-range dy rows are simply absent).
    dy = jnp.arange(3)[:, None, None]
    ho = jnp.arange(H)[None, :, None]
    hi = jnp.arange(H)[None, None, :]
    sel = (hi == ho + dy - 1).astype(jnp.float32)     # (3, H, H)

    def a_mat(dx):
        return jnp.einsum("efd,dhi->ehfi",
                          w1_full[:, :, :, dx], sel).reshape(E * H, F * H)

    a_cat = jnp.concatenate([a_mat(0), a_mat(1), a_mat(2)], axis=1)  # (E*H, 3*F*H)
    b1_big = jnp.repeat(params["b1"], H, axis=0)                     # (E*H, 1)

    # 1x1 conv (classes=1) as an (H, E*H) matrix.
    s_mat = jnp.einsum("e,hi->hei", params["w2"][0],
                       jnp.eye(H, dtype=jnp.float32)).reshape(H, E * H)

    # Decoder applied to both day orderings + averaging, folded to (2K, H):
    #   day1 = D_a @ e1 + D_b @ e2 ;  day2 = D_b @ e1 + D_a @ e2
    d_a = 0.5 * (wdec[:H, :K].T + wdec[H:, K:].T)                    # (K, H)
    d_b = 0.5 * (wdec[H:, :K].T + wdec[:H, K:].T)                    # (K, H)
    g = jnp.concatenate([d_a, d_b], axis=0) @ s_mat                  # (2K, E*H)

    b_dec = params["b_dec"][0]                                       # (2K,)
    b_out = (0.5 * (b_dec[:K] + b_dec[K:])
             + params["b2"][0, 0] * (d_a.sum(axis=1) + d_b.sum(axis=1))
             ).reshape(K, 1)                                         # (K, 1)
    return params["w_fe"], params["b_fe"], a_cat, b1_big, g, b_out


# ----------------------------------------------------------------------------
# Full forward pass (mirrors Spec2DCNN2Day.forward, labels=None path).
# ----------------------------------------------------------------------------
def spec2dcnn2day_forward(x, params, F, H):
    B, C, T = x.shape
    T2 = T // 2
    T = 2 * T2
    x = x[:, :, :T]                                   # even-length time axis

    w_fe, b_fe, a_cat, b1_big, g, b_out = derive_fused_params(params, F, H)
    K = b_out.shape[0]

    out_kt = pl.pallas_call(
        functools.partial(fused_forward_kernel, W=T2),
        out_shape=jax.ShapeDtypeStruct((B, K, T), jnp.float32),
        grid=(B,),
        in_specs=[
            pl.BlockSpec((1, C, T), lambda i: (i, 0, 0)),
            pl.BlockSpec(w_fe.shape, lambda i: (0, 0)),
            pl.BlockSpec(b_fe.shape, lambda i: (0, 0)),
            pl.BlockSpec(a_cat.shape, lambda i: (0, 0)),
            pl.BlockSpec(b1_big.shape, lambda i: (0, 0)),
            pl.BlockSpec(g.shape, lambda i: (0, 0)),
            pl.BlockSpec(b_out.shape, lambda i: (0, 0)),
        ],
        out_specs=pl.BlockSpec((1, K, T), lambda i: (i, 0, 0)),
        compiler_params=pltpu.CompilerParams(
            dimension_semantics=("parallel",)),      # batch elems independent (2 TCs on v7x)
    )(x, w_fe, b_fe, a_cat, b1_big, g, b_out)

    return jnp.transpose(out_kt, (0, 2, 1))           # (B, T, K) logits


# ----------------------------------------------------------------------------
# Pure-JAX reference (original, unfolded parameterization) for correctness.
# ----------------------------------------------------------------------------
def reference_forward(x, params, F, H):
    B, C, T = x.shape
    T2 = T // 2
    w1_full = params["w1_full"]
    E = w1_full.shape[0]

    def fe(xh):
        y = jnp.einsum("oc,bct->bot", params["w_fe"], xh) + params["b_fe"]
        return y.reshape(B, F, H, T2)

    def unet(f):
        h = jax.lax.conv_general_dilated(
            f, w1_full, (1, 1), "SAME",
            dimension_numbers=("NCHW", "OIHW", "NCHW")) + params["b1"].reshape(1, E, 1, 1)
        h = jnp.maximum(h, 0.0)
        y = jax.lax.conv_general_dilated(
            h, params["w2"].reshape(1, E, 1, 1), (1, 1), "SAME",
            dimension_numbers=("NCHW", "OIHW", "NCHW")) + params["b2"].reshape(1, 1, 1, 1)
        return y[:, 0]                                 # (B, H, T2)

    def dec(xc):
        return jnp.einsum("bct,ck->btk", xc, params["w_dec"]) + params["b_dec"]

    x1, x2 = x[:, :, :T2], x[:, :, T2:2 * T2]
    e1, e2 = unet(fe(x1)), unet(fe(x2))
    lg1 = dec(jnp.concatenate([e1, e2], axis=1))
    K = lg1.shape[2] // 2
    lg1 = jnp.concatenate([lg1[..., :K], lg1[..., K:]], axis=1)
    lg2 = dec(jnp.concatenate([e2, e1], axis=1))
    lg2 = jnp.concatenate([lg2[..., K:], lg2[..., :K]], axis=1)
    return (lg1 + lg2) / 2.0


# ----------------------------------------------------------------------------
if __name__ == "__main__":
    # Small, module-consistent shapes.
    B, C, T = 2, 4, 32       # (batch, n_channels, n_timesteps)
    F, H, E, K = 4, 8, 8, 2  # spectrogram filters/height, Unet hidden ch, base classes

    key = jax.random.PRNGKey(0)
    kx, k0, k1, k2, k3, k4, k5, k6, k7 = jax.random.split(key, 9)

    x = jax.random.normal(kx, (B, C, T), dtype=jnp.float32)

    # Deterministic synthetic parameters (no checkpoint loading).
    params = {
        "w_fe": jax.random.normal(k0, (F * H, C), jnp.float32) / np.sqrt(C),
        "b_fe": jax.random.normal(k1, (F * H, 1), jnp.float32) * 0.01,
        "w1_full": jax.random.normal(k2, (E, F, 3, 3), jnp.float32) / np.sqrt(F * 9),
        "b1": jax.random.normal(k3, (E, 1), jnp.float32) * 0.01,
        "w2": jax.random.normal(k4, (1, E), jnp.float32) / np.sqrt(E),
        "b2": jax.random.normal(k5, (1, 1), jnp.float32) * 0.01,
        "w_dec": jax.random.normal(k6, (2 * H, 2 * K), jnp.float32) / np.sqrt(2 * H),
        "b_dec": jax.random.normal(k7, (1, 2 * K), jnp.float32) * 0.01,
    }

    fwd = jax.jit(functools.partial(spec2dcnn2day_forward, F=F, H=H))
    logits = jax.block_until_ready(fwd(x, params))

    assert logits.shape == (B, T, K), logits.shape

    ref = reference_forward(x, params, F, H)
    np.testing.assert_allclose(np.asarray(logits), np.asarray(ref),
                               rtol=2e-3, atol=2e-3)

    print("KERNEL_OK")
</pallas_src>

<mosaic_0001>
module attributes {stable_mosaic.version = 11 : i64} {
  func.func @fused_forward_kernel(%arg0: i32, %arg1: memref<1x4x32xf32, #tpu.memory_space<vmem>>, %arg2: memref<32x4xf32, #tpu.memory_space<vmem>>, %arg3: memref<32x1xf32, #tpu.memory_space<vmem>>, %arg4: memref<64x96xf32, #tpu.memory_space<vmem>>, %arg5: memref<64x1xf32, #tpu.memory_space<vmem>>, %arg6: memref<4x64xf32, #tpu.memory_space<vmem>>, %arg7: memref<2x1xf32, #tpu.memory_space<vmem>>, %arg8: memref<1x2x32xf32, #tpu.memory_space<vmem>>) attributes {dimension_semantics = [#tpu.dimension_semantics<parallel>], iteration_bounds = array<i64: 2>, scalar_prefetch = 0 : i64, scratch_operands = 0 : i64, tpu.core_type = #tpu.core_type<tc>, window_params = [{transform_indices = @transform_0, window_bounds = array<i64: 1, 4, 32>}, {pipeline_mode = #tpu.pipeline_mode<synchronous>, transform_indices = @transform_1, window_bounds = array<i64: 32, 4>}, {pipeline_mode = #tpu.pipeline_mode<synchronous>, transform_indices = @transform_2, window_bounds = array<i64: 32, 1>}, {pipeline_mode = #tpu.pipeline_mode<synchronous>, transform_indices = @transform_3, window_bounds = array<i64: 64, 96>}, {pipeline_mode = #tpu.pipeline_mode<synchronous>, transform_indices = @transform_4, window_bounds = array<i64: 64, 1>}, {pipeline_mode = #tpu.pipeline_mode<synchronous>, transform_indices = @transform_5, window_bounds = array<i64: 4, 64>}, {pipeline_mode = #tpu.pipeline_mode<synchronous>, transform_indices = @transform_6, window_bounds = array<i64: 2, 1>}, {transform_indices = @transform_7, window_bounds = array<i64: 1, 2, 32>}]} {
    %c0 = arith.constant 0 : index
    %c0_0 = arith.constant 0 : index
    %c0_1 = arith.constant 0 : index
    %0 = vector.load %arg1[%c0, %c0_0, %c0_1] : memref<1x4x32xf32, #tpu.memory_space<vmem>>, vector<1x4x32xf32>
    %1 = vector.shape_cast %0 : vector<1x4x32xf32> to vector<4x32xf32>
    %c0_2 = arith.constant 0 : index
    %c0_3 = arith.constant 0 : index
    %2 = vector.load %arg2[%c0_2, %c0_3] : memref<32x4xf32, #tpu.memory_space<vmem>>, vector<32x4xf32>
    %cst = arith.constant dense<0.000000e+00> : vector<32x32xf32>
    %3 = tpu.matmul %2, %1, %cst {dimension_numbers = #tpu.dot_dimension_numbers<[1], [0], [0], [1], [0, 0, 1, 1], [], []>} : vector<32x4xf32>, vector<4x32xf32>, vector<32x32xf32> -> vector<32x32xf32>
    %c0_4 = arith.constant 0 : index
    %c0_5 = arith.constant 0 : index
    %4 = vector.load %arg3[%c0_4, %c0_5] : memref<32x1xf32, #tpu.memory_space<vmem>>, vector<32x1xf32>
    %5 = vector.broadcast %4 : vector<32x1xf32> to vector<32x32xf32>
    %6 = arith.addf %3, %5 : vector<32x32xf32>
    %cst_6 = arith.constant 0.000000e+00 : f32
    %7 = vector.broadcast %cst_6 : f32 to vector<32x1xf32>
    %8 = vector.extract_strided_slice %6 {offsets = [0, 0], sizes = [32, 31], strides = [1, 1]} : vector<32x32xf32> to vector<32x31xf32>
    %9 = tpu.concatenate %7, %8 in 1 : vector<32x1xf32>, vector<32x31xf32> -> vector<32x32xf32>
    %10 = vector.extract_strided_slice %6 {offsets = [0, 1], sizes = [32, 31], strides = [1, 1]} : vector<32x32xf32> to vector<32x31xf32>
    %11 = tpu.concatenate %10, %7 in 1 : vector<32x31xf32>, vector<32x1xf32> -> vector<32x32xf32>
    %12 = tpu.iota {dimensions = array<i32: 1>} : vector<32x32xi32>
    %c16_i32 = arith.constant 16 : i32
    %c0_i32 = arith.constant 0 : i32
    %13 = arith.cmpi eq, %c16_i32, %c0_i32 : i32
    %c1_i32 = arith.constant 1 : i32
    %14 = arith.select %13, %c1_i32, %c16_i32 : i32
    %15 = vector.broadcast %14 : i32 to vector<32x32xi32>
    %16 = arith.remsi %12, %15 : vector<32x32xi32>
    %c0_i32_7 = arith.constant 0 : i32
    %17 = vector.broadcast %c0_i32_7 : i32 to vector<32x32xi32>
    %18 = arith.cmpi ne, %16, %17 : vector<32x32xi32>
    %c0_i32_8 = arith.constant 0 : i32
    %19 = vector.broadcast %c0_i32_8 : i32 to vector<32x32xi32>
    %20 = arith.cmpi slt, %16, %19 : vector<32x32xi32>
    %c0_i32_9 = arith.constant 0 : i32
    %21 = arith.cmpi slt, %14, %c0_i32_9 : i32
    %22 = vector.broadcast %21 : i1 to vector<32x32xi1>
    %23 = vector.broadcast %22 : vector<32x32xi1> to vector<32x32xi1>
    %24 = arith.xori %20, %23 : vector<32x32xi1>
    %25 = arith.andi %24, %18 : vector<32x32xi1>
    %26 = vector.broadcast %14 : i32 to vector<32x32xi32>
    %27 = arith.addi %16, %26 : vector<32x32xi32>
    %28 = arith.select %25, %27, %16 : vector<32x32xi1>, vector<32x32xi32>
    %c0_i32_10 = arith.constant 0 : i32
    %29 = vector.broadcast %c0_i32_10 : i32 to vector<32x32xi32>
    %30 = arith.cmpi ne, %28, %29 : vector<32x32xi32>
    %cst_11 = arith.constant 0.000000e+00 : f32
    %31 = vector.broadcast %cst_11 : f32 to vector<32x32xf32>
    %32 = arith.select %30, %9, %31 : vector<32x32xi1>, vector<32x32xf32>
    %c15_i32 = arith.constant 15 : i32
    %33 = vector.broadcast %c15_i32 : i32 to vector<32x32xi32>
    %34 = arith.cmpi ne, %28, %33 : vector<32x32xi32>
    %cst_12 = arith.constant 0.000000e+00 : f32
    %35 = vector.broadcast %cst_12 : f32 to vector<32x32xf32>
    %36 = arith.select %34, %11, %35 : vector<32x32xi1>, vector<32x32xf32>
    %37 = tpu.concatenate %32, %6, %36 in 0 : vector<32x32xf32>, vector<32x32xf32>, vector<32x32xf32> -> vector<96x32xf32>
    %c0_13 = arith.constant 0 : index
    %c0_14 = arith.constant 0 : index
    %38 = vector.load %arg4[%c0_13, %c0_14] : memref<64x96xf32, #tpu.memory_space<vmem>>, vector<64x96xf32>
    %cst_15 = arith.constant dense<0.000000e+00> : vector<64x32xf32>
    %39 = tpu.matmul %38, %37, %cst_15 {dimension_numbers = #tpu.dot_dimension_numbers<[1], [0], [0], [1], [0, 0, 1, 1], [], []>} : vector<64x96xf32>, vector<96x32xf32>, vector<64x32xf32> -> vector<64x32xf32>
    %c0_16 = arith.constant 0 : index
    %c0_17 = arith.constant 0 : index
    %40 = vector.load %arg5[%c0_16, %c0_17] : memref<64x1xf32, #tpu.memory_space<vmem>>, vector<64x1xf32>
    %41 = vector.broadcast %40 : vector<64x1xf32> to vector<64x32xf32>
    %42 = arith.addf %39, %41 : vector<64x32xf32>
    %cst_18 = arith.constant 0.000000e+00 : f32
    %43 = vector.broadcast %cst_18 : f32 to vector<64x32xf32>
    %44 = arith.maximumf %42, %43 : vector<64x32xf32>
    %c0_19 = arith.constant 0 : index
    %c0_20 = arith.constant 0 : index
    %45 = vector.load %arg6[%c0_19, %c0_20] : memref<4x64xf32, #tpu.memory_space<vmem>>, vector<4x64xf32>
    %cst_21 = arith.constant dense<0.000000e+00> : vector<4x32xf32>
    %46 = tpu.matmul %45, %44, %cst_21 {dimension_numbers = #tpu.dot_dimension_numbers<[1], [0], [0], [1], [0, 0, 1, 1], [], []>} : vector<4x64xf32>, vector<64x32xf32>, vector<4x32xf32> -> vector<4x32xf32>
    %47 = vector.extract_strided_slice %46 {offsets = [2, 16], sizes = [2, 16], strides = [1, 1]} : vector<4x32xf32> to vector<2x16xf32>
    %48 = vector.extract_strided_slice %46 {offsets = [2, 0], sizes = [2, 16], strides = [1, 1]} : vector<4x32xf32> to vector<2x16xf32>
    %49 = tpu.concatenate %47, %48 in 1 : vector<2x16xf32>, vector<2x16xf32> -> vector<2x32xf32>
    %50 = vector.extract_strided_slice %46 {offsets = [0, 0], sizes = [2, 32], strides = [1, 1]} : vector<4x32xf32> to vector<2x32xf32>
    %51 = arith.addf %50, %49 : vector<2x32xf32>
    %c0_22 = arith.constant 0 : index
    %c0_23 = arith.constant 0 : index
    %52 = vector.load %arg7[%c0_22, %c0_23] : memref<2x1xf32, #tpu.memory_space<vmem>>, vector<2x1xf32>
    %53 = vector.broadcast %52 : vector<2x1xf32> to vector<2x32xf32>
    %54 = arith.addf %51, %53 : vector<2x32xf32>
    %c0_24 = arith.constant 0 : index
    %c0_25 = arith.constant 0 : index
    %c0_26 = arith.constant 0 : index
    %55 = vector.load %arg8[%c0_24, %c0_25, %c0_26] : memref<1x2x32xf32, #tpu.memory_space<vmem>>, vector<1x2x32xf32>
    %56 = vector.shape_cast %55 : vector<1x2x32xf32> to vector<2x32xf32>
    %57 = vector.shape_cast %54 : vector<2x32xf32> to vector<1x2x32xf32>
    tpu.vector_store %arg8[%c0_24, %c0_25, %c0_26], %57 {strides = array<i32>} : memref<1x2x32xf32, #tpu.memory_space<vmem>>, vector<1x2x32xf32>,
    return
  }
  func.func @transform_0(%arg0: i32) -> (i32, i32, i32) {
    %c0_i32 = arith.constant 0 : i32
    %c0_i32_0 = arith.constant 0 : i32
    %c0_i32_1 = arith.constant 0 : i32
    return %arg0, %c0_i32, %c0_i32_0 : i32, i32, i32
  }
  func.func @transform_1(%arg0: i32) -> (i32, i32) {
    %c0_i32 = arith.constant 0 : i32
    %c0_i32_0 = arith.constant 0 : i32
    %c0_i32_1 = arith.constant 0 : i32
    return %c0_i32, %c0_i32_0 : i32, i32
  }
  func.func @transform_2(%arg0: i32) -> (i32, i32) {
    %c0_i32 = arith.constant 0 : i32
    %c0_i32_0 = arith.constant 0 : i32
    %c0_i32_1 = arith.constant 0 : i32
    return %c0_i32, %c0_i32_0 : i32, i32
  }
  func.func @transform_3(%arg0: i32) -> (i32, i32) {
    %c0_i32 = arith.constant 0 : i32
    %c0_i32_0 = arith.constant 0 : i32
    %c0_i32_1 = arith.constant 0 : i32
    return %c0_i32, %c0_i32_0 : i32, i32
  }
  func.func @transform_4(%arg0: i32) -> (i32, i32) {
    %c0_i32 = arith.constant 0 : i32
    %c0_i32_0 = arith.constant 0 : i32
    %c0_i32_1 = arith.constant 0 : i32
    return %c0_i32, %c0_i32_0 : i32, i32
  }
  func.func @transform_5(%arg0: i32) -> (i32, i32) {
    %c0_i32 = arith.constant 0 : i32
    %c0_i32_0 = arith.constant 0 : i32
    %c0_i32_1 = arith.constant 0 : i32
    return %c0_i32, %c0_i32_0 : i32, i32
  }
  func.func @transform_6(%arg0: i32) -> (i32, i32) {
    %c0_i32 = arith.constant 0 : i32
    %c0_i32_0 = arith.constant 0 : i32
    %c0_i32_1 = arith.constant 0 : i32
    return %c0_i32, %c0_i32_0 : i32, i32
  }
  func.func @transform_7(%arg0: i32) -> (i32, i32, i32) {
    %c0_i32 = arith.constant 0 : i32
    %c0_i32_0 = arith.constant 0 : i32
    %c0_i32_1 = arith.constant 0 : i32
    return %arg0, %c0_i32, %c0_i32_0 : i32, i32, i32
  }
}

</mosaic_0001>

<bundles_post_ra>
// kernel: spec2dcnn2day_forward.1
= control target key start
LH: loop header
LB: loop body
LE: loop exit
PB: predicated region body
PF: predicated region fallthrough
CT: control target
= control target key end

     0   :  { %12 = vsyncpa [#allocation3], 0  ;;  %s1384_s0 = inlined_call_operand.vmem [shape: f32[2,4,32], index: 0, kind: input, shape index: {}]   ;;  %s1385_s1 = inlined_call_operand.vmem [shape: f32[32,4], index: 1, kind: input, shape index: {}]   ;;  %s1386_s2 = inlined_call_operand.vmem [shape: f32[32,1], index: 2, kind: input, shape index: {}]   ;;  %s1387_s3 = inlined_call_operand.vmem [shape: f32[64,96], index: 3, kind: input, shape index: {}]   ;;  %s1388_s4 = inlined_call_operand.vmem [shape: f32[64,1], index: 4, kind: input, shape index: {}]   ;;  %s1389_s5 = inlined_call_operand.vmem [shape: f32[4,64], index: 5, kind: input, shape index: {}]   ;;  %s1390_s6 = inlined_call_operand.vmem [shape: f32[2,1], index: 6, kind: input, shape index: {}]   ;;  %s1391_s7 = inlined_call_operand.hbm [shape: f32[2,2,32], index: 7, kind: output, shape index: {}]  }
   0x1   :  { %14 = vsyncpa [#allocation3 + $0x1], 0  ;;  %s1186_s24 = smov 0   ;;  %s1188_s25 = smov 0  }
   0x2   :  { %s1190_s26 = smov 0   ;;  %s1192_s27 = smov 0  }
   0x3 LB: > { %s1207_s28 = sadd.s32 4294967295, %s1135_s27   ;;  %s831_s29 = sadd.s32 4294967294, %s1135_s27   ;;  %s1135_s27 = sphi %s1192_s27, %s1397_s27   ;;  %s1131_s26 = sphi %s1190_s26, %s1396_s26   ;;  %s1127_s25 = sphi %s1188_s25, %s1395_s25   ;;  %s1123_s24 = sphi %s1186_s24, %s1394_s24  }
   0x4   : > { %s1211_s30 = sadd.s32 1, %s1135_s27   ;;  %s179_s8 = sadd.s32 1, %s1131_s26 }
   0x5   : > { %s176_s9 = ssub.s32 %s1135_s27, %s1211_s30  ;;  %p189_p0 = scmp.ne.s32.totalorder %s1131_s26, %s1127_s25 }
   0x6   : > { %p177_p1 = scmp.eq.s32.totalorder %s176_s9, 0  ;;  %p190_p2 = scmp.eq.s32.totalorder %s1207_s28, 1 }
   0x7   : > { %p195_p3 = scmp.ne.s32.totalorder %s1127_s25, %s1123_s24  ;;  %p196_p4 = scmp.eq.s32.totalorder %s831_s29, 1 }
   0x8   : > { %s1222_s10 = scalar_select %p177_p1, %s1131_s26, %s179_s8  }
   0x9   : > { %p1224_p5 = por %p190_p2, %p189_p0  ;;  %p1228_p6 = por %p196_p4, %p195_p3 }
   0xa   : > { %p834_p7 = scmp.ge.s32.totalorder %s1135_s27, 1  ;;  %p239_p8 = scmp.lt.s32.totalorder %s1135_s27, 3 }
   0xc   : > { %p240_p9 = pnand %p834_p7, %p239_p8 }
   0xd   : > { %p270_p10 = scmp.lt.s32.totalorder (!%p240_p9), %s1207_s28, 1  ;;  %v275_v0 = vld [vmem:[%s1385_s1] sm:$0xff] (!%p240_p9)  ;;  %vm303_vm0 = vcmask (!%p240_p9), 31744   ;;  %v281_v2 = vld [vmem:[%s1386_s2 + $0x10] sm:$0xff] (!%p240_p9)  ;;  %v1137_v3 = vmov (!%p240_p9), 0   ;;  %vm316_vm1 = vcmask (!%p240_p9), 1043456   ;;  %v443_v36 = vlaneseq (!%p240_p9) }
   0xe   : > { %243 = sbr.rel (%p240_p9) target bundleno = 971 (0x3cb), region = 48  ;;  %899 = vmatprep.mubr.msk.f32.mxu0 (!%p240_p9), %vm303_vm0, %v275_v0  ;;  %v279_v1 = vld [vmem:[%s1386_s2] sm:$0xff] (!%p240_p9)  ;;  %1051 = vset.pattern.permute.xlu0 (!%p240_p9), %v1137_v3  ;;  %v280_v4 = vld [vmem:[%s1386_s2 + $0x8] sm:$0xff] (!%p240_p9)  ;;  %v282_v5 = vld [vmem:[%s1386_s2 + $0x18] sm:$0xff] (!%p240_p9)  ;;  %s1139_s21 = smov (!%p240_p9), 127   ;;  %vm523_vm2 = vcmask (!%p240_p9), 785408  }
   0xf   : > { %1052 = vset.pattern.permute.xlu1 (!%p240_p9), %v1137_v3  ;;  %285 = vperm.xlu0 (!%p240_p9), %1051, %v279_v1   ;;  %v276_v7 = vld [vmem:[%s1385_s1 + $0x8] sm:$0xff] (!%p240_p9)  ;;  %v277_v8 = vld [vmem:[%s1385_s1 + $0x10] sm:$0xff] (!%p240_p9)  ;;  %v278_v9 = vld [vmem:[%s1385_s1 + $0x18] sm:$0xff] (!%p240_p9)  ;;  %v444_v37 = vand.u32 (!%p240_p9), 127, %v443_v36  ;;  %vm421_vm3 = vcmask (!%p240_p9), 7168   ;;  %vm438_vm6 = vcmask (!%p240_p9), 252928  }
  0x10   : > { %295 = vperm.xlu1 (!%p240_p9), %1052, %v281_v2   ;;  %v475_v26 = vld [vmem:[%s1388_s4] sm:$0xff] (!%p240_p9)  ;;  %v476_v27 = vld [vmem:[%s1388_s4 + $0x8] sm:$0xff] (!%p240_p9)  ;;  %v477_v28 = vld [vmem:[%s1388_s4 + $0x10] sm:$0xff] (!%p240_p9)  ;;  %vm1141_vm9 = vmmov (!%p240_p9), 0   ;;  %vm662_vm10 = vcmask (!%p240_p9), 523264   ;;  %s1143_s16 = smov (!%p240_p9), 16  }
  0x11   : > { %v478_v29 = vld [vmem:[%s1388_s4 + $0x18] sm:$0xff] (!%p240_p9)  ;;  %v479_v30 = vld [vmem:[%s1388_s4 + $0x20] sm:$0xff] (!%p240_p9)  ;;  %v480_v32 = vld [vmem:[%s1388_s4 + $0x28] sm:$0xff] (!%p240_p9)  ;;  %v449_v38 = vand.u32 (!%p240_p9), 15, %v444_v37  ;;  %s1144_s17 = smov (!%p240_p9), 112   ;;  %s267_s18 = sand.u32 (!%p240_p9), 1, %s1127_s25  }
  0x12   : > { %v467_v31 = vld [vmem:[%s1387_s3] sm:$0xff] (!%p240_p9)  ;;  %v481_v33 = vld [vmem:[%s1388_s4 + $0x30] sm:$0xff] (!%p240_p9)  ;;  %v482_v34 = vld [vmem:[%s1388_s4 + $0x38] sm:$0xff] (!%p240_p9)  ;;  %vm743_vm11 = vcmask (!%p240_p9), 130048   ;;  %vm756_vm12 = vcmask (!%p240_p9), 254976   ;;  %s759_s9 = scalar_lea.sflag (!%p240_p9), [#allocation3], %s267_s18 }
  0x13   : > { %290 = vperm.xlu0 (!%p240_p9), %1051, %v280_v4   ;;  %929 = vmatprep.mubr.msk.f32.mxu1 (!%p240_p9), %vm523_vm2, %v467_v31  ;;  %v749_v35 = vld [vmem:[%s1390_s6] sm:$0x3] (!%p240_p9)  ;;  %vm457_vm4 = vcmp.ne.s32.totalorder (!%p240_p9), %v449_v38, 0  ;;  %vm462_vm7 = vcmp.ne.s32.totalorder (!%p240_p9), %v449_v38, 15  ;;  %v468_v63 = vld [vmem:[%s1387_s3 + $0x8] sm:$0xff] (!%p240_p9)  ;;  %v469_v0 = vld [vmem:[%s1387_s3 + $0x10] sm:$0xff] (!%p240_p9) }
  0x14   : > { %300 = vperm.xlu1 (!%p240_p9), %1052, %v282_v5   ;;  %vm961_vm5 = vmpackc.low (!%p240_p9), %vm457_vm4, %vm457_vm4  ;;  %v470_v1 = vld [vmem:[%s1387_s3 + $0x18] sm:$0xff] (!%p240_p9)  ;;  %v471_v2 = vld [vmem:[%s1387_s3 + $0x20] sm:$0xff] (!%p240_p9) }
  0x15   : > { %s271_s19 = scalar_select %p270_p10, %s1207_s28, 1  ;;  %vm981_vm8 = vmpackc.low %vm462_vm7, %vm462_vm7  ;;  %v472_v3 = vld [vmem:[%s1387_s3 + $0x28] sm:$0xff]  ;;  %v473_v4 = vld [vmem:[%s1387_s3 + $0x30] sm:$0xff] }
  0x16   : > { %v474_v5 = vld [vmem:[%s1387_s3 + $0x38] sm:$0xff] }
  0x17   : > { %s836_s20 = sshll.u32 %s271_s19, 2  ;;  %s835_s19 = sshll.u32 %s267_s18, 1 }
  0x18   : > { %s273_s8 = scalar_lea.vmem %s1384_s0, %s836_s20  ;;  %s1138_s20 = smov 1  }
  0x19   : > { %v274_v6 = vld [vmem:[%s273_s8] sm:$0xf] }
  0x1a   : > { %897 = vmatprep.subr.msk.mxu0 %vm316_vm1, %v274_v6 }
  0x1b   : > { %898 = vmatpush3.msk.msra.mxu0 %vm316_vm1, %v274_v6  ;;  %v1140_v6 = vmov 0.0|0.0  }
  0x1c   : > { %900 = vmatmul.mubr.msk.f32.vlgmr.msra.gmra.mrb[0].mxu0 %vm303_vm0, %v276_v7  ;;  %992 = vmatprep.subr.bf16.mxu0 %v1140_v6  ;;  %v1142_v7 = vmov 0.0  }
  0x1d   : > { %902 = vmatprep.mubr.msk.f32.mxu0 %vm303_vm0, %v277_v8 }
  0x20   : > { %903 = vmatmul.mubr.msk.f32.gmra.mrb[2].mxu0 %vm303_vm0, %v278_v9 }
  0x21   : > { %957 = vmatprep.mubr.msk.f32.mxu0 %vm1141_vm9, %v1142_v7 }
  0x8e   : > { %v286_v10 = vpop.permute.xlu0 %285 }
  0x8f   : > { %v296_v11 = vpop.permute.xlu1 %295 }
  0x92   : > { %v291_v12 = vpop.permute.xlu0 %290 }
  0x93   : > { %v301_v17 = vpop.permute.xlu1 %300 }
  0xef   : > { %v901_v13 = vpop.f32.mrb[0].mxu0 }
  0xf0   : > { %v392_v14 = vadd.f32 %v901_v13, %v291_v12  ;;  %v386_v15 = vpop.f32.mrb[1].mxu0 }
  0xf1   : > { %v387_v16 = vadd.f32 %v386_v15, %v286_v10 }
  0xf3   : > { %v904_v18 = vpop.f32.mrb[2].mxu0  ;;  %v1053_v19 = vpack.i.bf16 %v392_v14, %v387_v16  ;;  %v1267_v20 = vpack.c.bf16 %v392_v14, %v387_v16 }
  0xf4   : > { %v402_v21 = vadd.f32 %v904_v18, %v301_v17  ;;  %v396_v22 = vpop.f32.mrb[3].mxu0 }
  0xf5   : > { %v397_v23 = vadd.f32 %v396_v22, %v296_v11  ;;  %1054 = vrot.lane.b32.xlu0 %v1053_v19, %s1138_s20 }
  0xf7   : > { %v1058_v24 = vpack.i.bf16 %v402_v21, %v397_v23  ;;  %v1269_v25 = vpack.c.bf16 %v402_v21, %v397_v23 }
  0xf9   : > { %1059 = vrot.lane.b32.xlu1 %v1058_v24, %s1138_s20  ;;  %1064 = vrot.lane.b32.xlu0 %v1053_v19, %s1139_s21  ;;  %s860_s20 = sshll.u32 %s1207_s28, 5  ;;  %s1145_s28 = smov [#allocation2]  }
  0xfa   : > { %s1342_s8 = scalar_lea.hbm %s1391_s7, %s860_s20  ;;  %s1077_s14 = sshll.u32 %s1145_s28, 4  ;;  %s1078_s14 = int_to_ptr.vmem [resolvable:$false] %s1077_s14 }
  0xfb   : > { %s1079_s15 = scalar_lea.vmem %s1078_s14, 64 }
  0xfd   : > { %1069 = vrot.lane.b32.xlu1 %v1058_v24, %s1139_s21  ;;  %485 = vperm.xlu0 %1051, %v475_v26   ;;  %s269_s21 = scalar_lea.vmem [#allocation2], %s835_s19 }
  0xfe   : > { %s772_s22 = sshll.u32 %s269_s21, 4  ;;  %s1344_s22 = int_to_ptr.vmem [resolvable:$true] %s772_s22 }
  0xff   : > { %s1073_s13 = scalar_lea.vmem %s1344_s22, 32  ;;  %p1080_p0 = scmp.lt.s32.totalorder %s1344_s22, %s1078_s14 }
 0x100   : > { %p1074_p11 = scmp.ne.s32.totalorder %s1344_s22, %s1073_s13  ;;  %p1081_p1 = scmp.lt.s32.totalorder %s1079_s15, %s1073_s13 }
 0x101   : > { %490 = vperm.xlu1 %1052, %v476_v27   ;;  %495 = vperm.xlu0 %1051, %v477_v28  }
 0x102   : > { %p1075_p12 = pnand %p1074_p11, %p1224_p5  ;;  %p1082_p2 = por %p1081_p1, %p1080_p0 }
 0x104   : > { %p1076_p13 = pneg %p1075_p12 }
 0x105   : > { %500 = vperm.xlu1 %1052, %v478_v29   ;;  %505 = vperm.xlu0 %1051, %v479_v30  }
 0x106   : > { %p1083_p3 = pnand %p1082_p2, %p1076_p13 }
 0x109   : > { %510 = vperm.xlu1 %1052, %v480_v32   ;;  %515 = vperm.xlu0 %1051, %v481_v33  }
 0x10d   : > { %520 = vperm.xlu1 %1052, %v482_v34   ;;  %752 = vperm.xlu0 %1051, %v749_v35  }
 0x167   : > { %v1055_v39 = vpop.permute.xlu0 %1054 }
 0x168   : > { %v1057_v40 = vunpack.i.h.bf16 %v1055_v39  ;;  %v1056_v41 = vunpack.i.l.bf16 %v1055_v39 }
 0x16a   : > { %v422_v42 = vsel %vm421_vm3, 0.0, %v1056_v41  ;;  %v423_v43 = vsel %vm421_vm3, 0.0, %v1057_v40 }
 0x16b   : > { %v1060_v44 = vpop.permute.xlu1 %1059  ;;  %v960_v45 = vpack.c.bf16 %v423_v43, %v422_v42  ;;  %v1065_v51 = vpop.permute.xlu0 %1064 }
 0x16c   : > { %v1062_v46 = vunpack.i.h.bf16 %v1060_v44  ;;  %v1061_v47 = vunpack.i.l.bf16 %v1060_v44  ;;  %v1067_v52 = vunpack.i.h.bf16 %v1065_v51  ;;  %v1066_v53 = vunpack.i.l.bf16 %v1065_v51  ;;  %v661_v44 = vld [vmem:[%s1389_s5] sm:$0xf] }
 0x16d   : > { %962 = vmatprep.subr.msk.bf16.mxu1 %vm961_vm5, %v960_v45 }
 0x16e   : > { %v425_v48 = vsel %vm421_vm3, 0.0, %v1062_v46  ;;  %v424_v49 = vsel %vm421_vm3, 0.0, %v1061_v47  ;;  %965 = vmatpush3.bf16.msk.msra.mxu1 %vm961_vm5, %v960_v45  ;;  %v440_v55 = vsel %vm438_vm6, %v1067_v52, 0.0  ;;  %v439_v56 = vsel %vm438_vm6, %v1066_v53, 0.0 }
 0x16f   : > { %v966_v50 = vpack.c.bf16 %v425_v48, %v424_v49  ;;  %v1070_v54 = vpop.permute.xlu1 %1069  ;;  %v980_v59 = vpack.c.bf16 %v440_v55, %v439_v56 }
 0x170   : > { %v1072_v57 = vunpack.i.h.bf16 %v1070_v54  ;;  %v1071_v58 = vunpack.i.l.bf16 %v1070_v54 }
 0x171   : > { %968 = vmatprep.subr.msk.bf16.mxu1 %vm961_vm5, %v966_v50 }
 0x172   : > { %971 = vmatpush3.bf16.msk.msra.mxu1 %vm961_vm5, %v966_v50  ;;  %v442_v60 = vsel %vm438_vm6, %v1072_v57, 0.0  ;;  %v441_v61 = vsel %vm438_vm6, %v1071_v58, 0.0 }
 0x173   : > { %973 = vmatprep.subr.bf16.mxu1 %v1267_v20  ;;  %v986_v62 = vpack.c.bf16 %v442_v60, %v441_v61 }
 0x176   : > { %975 = vmatpush3.bf16.msra.mxu1 %v1267_v20 }
 0x177   : > { %977 = vmatprep.subr.bf16.mxu1 %v1269_v25 }
 0x17a   : > { %979 = vmatpush3.bf16.msra.mxu1 %v1269_v25 }
 0x17b   : > { %982 = vmatprep.subr.msk.bf16.mxu1 %vm981_vm8, %v980_v59 }
 0x17c   : > { %v486_v9 = vpop.permute.xlu0 %485 }
 0x17e   : > { %985 = vmatpush3.bf16.msk.msra.mxu1 %vm981_vm8, %v980_v59 }
 0x17f   : > { %988 = vmatprep.subr.msk.bf16.mxu1 %vm981_vm8, %v986_v62 }
 0x180   : > { %v491_v8 = vpop.permute.xlu1 %490  ;;  %v496_v12 = vpop.permute.xlu0 %495 }
 0x182   : > { %991 = vmatpush3.bf16.msk.msra.mxu1 %vm981_vm8, %v986_v62 }
 0x184   : > { %v501_v10 = vpop.permute.xlu1 %500  ;;  %v506_v24 = vpop.permute.xlu0 %505 }
 0x185   : > { %930 = vmatmul.mubr.msk.f32.vlgmr.msra.gmra.mrb[0].mxu1 %vm523_vm2, %v468_v63 }
 0x186   : > { %932 = vmatprep.mubr.msk.f32.mxu1 %vm523_vm2, %v469_v0 }
 0x188   : > { %v511_v21 = vpop.permute.xlu1 %510  ;;  %v516_v36 = vpop.permute.xlu0 %515 }
 0x189   : > { %933 = vmatmul.mubr.msk.f32.gmra.mrb[2].mxu1 %vm523_vm2, %v470_v1 }
 0x18a   : > { %935 = vmatprep.mubr.msk.f32.mxu1 %vm523_vm2, %v471_v2 }
 0x18c   : > { %v521_v33 = vpop.permute.xlu1 %520  ;;  %v753_v47 = vpop.permute.xlu0 %752 }
 0x18d   : > { %936 = vmatmul.mubr.msk.f32.gmra.mrb[4].mxu1 %vm523_vm2, %v472_v3 }
 0x18e   : > { %938 = vmatprep.mubr.msk.f32.mxu1 %vm523_vm2, %v473_v4 }
 0x191   : > { %939 = vmatmul.mubr.msk.f32.gmra.mrb[6].mxu1 %vm523_vm2, %v474_v5 }
 0x258   : > { %v931_v11 = vpop.f32.mrb[0].mxu1 }
 0x259   : > { %v620_v13 = vadd.f32 %v931_v11, %v491_v8  ;;  %v614_v14 = vpop.f32.mrb[1].mxu1 }
 0x25a   : > { %v615_v15 = vadd.f32 %v614_v14, %v486_v9 }
 0x25b   : > { %v654_v16 = vmax.f32 %v620_v13, 0.0 }
 0x25c   : > { %v653_v17 = vmax.f32 %v615_v15, 0.0  ;;  %v934_v18 = vpop.f32.mrb[2].mxu1 }
 0x25d   : > { %v630_v19 = vadd.f32 %v934_v18, %v501_v10  ;;  %v624_v20 = vpop.f32.mrb[3].mxu1 }
 0x25e   : > { %v993_v22 = vpack.c.bf16 %v654_v16, %v653_v17  ;;  %v625_v23 = vadd.f32 %v624_v20, %v496_v12 }
 0x25f   : > { %v656_v25 = vmax.f32 %v630_v19, 0.0 }
 0x260   : > { %v655_v26 = vmax.f32 %v625_v23, 0.0  ;;  %v937_v27 = vpop.f32.mrb[4].mxu1  ;;  %994 = vmatpush3.bf16.msra.mxu0 %v993_v22 }
 0x261   : > { %v640_v28 = vadd.f32 %v937_v27, %v511_v21  ;;  %v634_v29 = vpop.f32.mrb[5].mxu1  ;;  %995 = vmatprep.subr.bf16.mxu0 %v1140_v6 }
 0x262   : > { %v996_v30 = vpack.c.bf16 %v656_v25, %v655_v26  ;;  %v635_v31 = vadd.f32 %v634_v29, %v506_v24 }
 0x263   : > { %v658_v32 = vmax.f32 %v640_v28, 0.0 }
 0x264   : > { %v657_v34 = vmax.f32 %v635_v31, 0.0  ;;  %v940_v35 = vpop.f32.mrb[6].mxu1  ;;  %997 = vmatpush3.bf16.msra.mxu0 %v996_v30 }
 0x265   : > { %v650_v37 = vadd.f32 %v940_v35, %v521_v33  ;;  %v644_v38 = vpop.f32.mrb[7].mxu1  ;;  %998 = vmatprep.subr.bf16.mxu0 %v1140_v6 }
 0x266   : > { %v999_v39 = vpack.c.bf16 %v658_v32, %v657_v34  ;;  %v645_v40 = vadd.f32 %v644_v38, %v516_v36 }
 0x267   : > { %v660_v41 = vmax.f32 %v650_v37, 0.0 }
 0x268   : > { %v659_v42 = vmax.f32 %v645_v40, 0.0  ;;  %1000 = vmatpush3.bf16.msra.mxu0 %v999_v39 }
 0x269   : > { %1001 = vmatprep.subr.bf16.mxu0 %v1140_v6 }
 0x26a   : > { %v1002_v43 = vpack.c.bf16 %v660_v41, %v659_v42 }
 0x26c   : > { %1003 = vmatpush3.bf16.msra.mxu0 %v1002_v43 }
 0x26f   : > { %958 = vmatmul.mubr.msk.f32.vlgmr.msra.gmra.mrb[4].mxu0 %vm662_vm10, %v661_v44 }
 0x342   : > { %v732_v45 = vpop.f32.mrb[4].mxu0 }
 0x343   : > { %740 = vrot.lane.b32.xlu0 %v732_v45, %s1143_s16  ;;  %737 = vrot.lane.b32.xlu1 %v732_v45, %s1144_s17  ;;  %v959_v46 = vpop.f32.mrb[5].mxu0 }
 0x3b5   : > { %v741_v48 = vpop.permute.xlu0 %740  ;;  %v738_v49 = vpop.permute.xlu1 %737 }
 0x3b6   : > { %v744_v50 = vsel %vm743_vm11, %v738_v49, %v741_v48 }
 0x3b7   : > { %v746_v51 = vrot.slane %v744_v50, 2 }
 0x3b9   : > { %v748_v52 = vadd.f32 %v746_v51, %v732_v45 }
 0x3bb   : > { %v755_v53 = vadd.f32 %v753_v47, %v748_v52 }
 0x3bd   : > { %757 = vst.msk [vmem:[%s269_s21] sm:$0x3] %vm756_vm12, %v755_v53 }
 0x3be   : > { %1086 = shalt.err (!%p1083_p3)
}
 0x3bf   : > { %s1087_s16 = scalar_lea.hbm %s1342_s8, 32  ;;  %s1091_s19 = scalar_lea.hbm %s1391_s7, 64 }
 0x3c0   : > { %p1088_p4 = scmp.ne.s32.totalorder %s1342_s8, %s1087_s16  ;;  %p1092_p9 = scmp.lt.u32.totalorder %s1342_s8, %s1391_s7 }
 0x3c1   : > { %p1093_p10 = scmp.lt.u32.totalorder %s1091_s19, %s1087_s16  ;;  %p1095_p12 = scmp.lt.u32.totalorder %s1087_s16, %s1342_s8 }
 0x3c2   : > { %p1089_p7 = pnand %p1088_p4, %p1224_p5 }
 0x3c3   : > { %p1094_p11 = por %p1093_p10, %p1092_p9 }
 0x3c4   : > { %p1090_p8 = pneg %p1089_p7 }
 0x3c5   : > { %p1096_p13 = por %p1095_p12, %p1094_p11 }
 0x3c7   : > { %p1097_p0 = pnand %p1096_p13, %p1090_p8 }
 0x3c9   : > { %1100 = shalt.err (!%p1097_p0)
}
 0x3ca   : > { %1004 = dma.vmem_to_hbm [thread:$0]  (%p1224_p5), %s1344_s22, 32, %s1342_s8, %s759_s9  }
 0x3cb PF: > { %p1010_p1 = scmp.ge.s32.totalorder %s1135_s27, 2  ;;  %s784_s23 = sand.u32 1, %s1123_s24  }
 0x3cc   : > { %s785_s29 = scalar_lea.sflag [#allocation3], %s784_s23 }
 0x3cd   : > { %p1007_p2 = pnand %p1010_p1, %p1228_p6 }
 0x3cf   : > { %1118 = dma.done.wait (!%p1007_p2), %s785_s29, 32  }
 0x3d0   : > { %1120 = vsyncadd (!%p1007_p2), %s785_s29, 4294967264  ;;  %p17_p3 = scmp.ge.s32.totalorder %s1211_s30, 4   ;;  %s1394_s24 = smov %s1127_s25 }
 0x3d1   : > { %s1395_s25 = smov %s1131_s26  ;;  %s1396_s26 = smov %s1222_s10 }
 0x3d2   : > { %s1397_s27 = smov %s1211_s30  ;;  %19 = sbr.rel (!%p17_p3) target bundleno = 3 (0x3), region = 83 }
 0x3d9   :  { %790 = vsyncpa [#allocation3], 1 }
 0x3da   :  { %792 = vsyncpa [#allocation3 + $0x1], 1 }

</bundles_post_ra>
